<compile_context>
chip_gen: v5e
topology: v5e:2x2
jax: 0.10.0
libtpu: 0.0.40
codegen_flags: <defaults>
</compile_context>

<pallas_src>
import numpy as np
import jax
import jax.numpy as jnp
from jax.experimental import pallas as pl
from jax.experimental.pallas import tpu as pltpu


def _round_up(x: int, m: int) -> int:
    return ((x + m - 1) // m) * m


def make_degree_discriminator(all_degrees: np.ndarray, key: jax.Array):
    """Builds params and returns (forward, params); forward(embs, degrees) -> (pred, true)."""
    # --- "__init__": static percentile thresholds ----------------------------
    p25 = float(np.percentile(all_degrees, 25))
    p50 = float(np.percentile(all_degrees, 50))
    p75 = float(np.percentile(all_degrees, 75))

    k1, k2, k3, k4 = jax.random.split(key, 4)
    # Linear(64, 32) and Linear(32, 4); stored (in, out) so the kernel does
    # plain x @ W + b.  Both weights are bf16 so both GEMMs are single-pass
    # bf16 x bf16 -> f32 on the MXU.
    w1 = (jax.random.normal(k1, (64, 32), jnp.float32) * 0.05).astype(jnp.bfloat16)
    b1 = jax.random.normal(k2, (1, 32), jnp.float32) * 0.01
    w2 = (jax.random.normal(k3, (32, 4), jnp.float32) * 0.05).astype(jnp.bfloat16)
    b2 = jax.random.normal(k4, (1, 4), jnp.float32) * 0.01

    # Bucket [lo, hi) thresholds as (1, 4) vectors -> pallas *inputs* (not
    # closure constants), resident across the whole grid via a constant
    # index_map.  Bucket c holds lo[c] <= d < hi[c], matching the PyTorch
    # module's (d < p25), [p25, p50), [p50, p75), (d >= p75) semantics.
    lo = jnp.array([[-jnp.inf, p25, p50, p75]], jnp.float32)
    hi = jnp.array([[p25, p50, p75, jnp.inf]], jnp.float32)

    # --- Pallas kernel: fused MLP + degree bucketing --------------------------
    def kernel(embs_ref, deg_ref, w1_ref, b1_ref, w2_ref, b2_ref,
               lo_ref, hi_ref, pred_ref, true_ref):
        x = embs_ref[...].astype(jnp.bfloat16)                    # (T, 64) bf16
        h = jnp.dot(x, w1_ref[...], preferred_element_type=jnp.float32)
        h = jnp.maximum(h + b1_ref[...], 0.0)                     # (T, 32) f32, ReLU
        pred_ref[...] = jnp.dot(h.astype(jnp.bfloat16), w2_ref[...],
                                preferred_element_type=jnp.float32) + b2_ref[...]

        d = deg_ref[...]                                          # (T, 1) f32
        # One broadcast compare against the (1, 4) lo/hi thresholds -> one-hot.
        true_ref[...] = ((d >= lo_ref[...]) & (d < hi_ref[...])).astype(jnp.float32)

    def forward(embs: jax.Array, degrees: jax.Array, *, tile_n: int = 8192):
        n = embs.shape[0]
        # Tile rows are a multiple of 128 (robust for f32/bf16 sublane tiling),
        # capped near n so small inputs use a single (padded) block.
        tile = _round_up(min(int(tile_n), _round_up(n, 128)), 128)
        num_tiles = pl.cdiv(n, tile)

        d = degrees.reshape(-1, 1).astype(jnp.float32)            # free reshape

        itemsize = embs.dtype.itemsize
        # Double-buffered VMEM: embs block + lane-padded degrees/pred/true blocks.
        vmem_need = 2 * tile * (64 * itemsize + 3 * 128 * 4)
        vmem_limit = max(vmem_need + (8 << 20), 32 << 20)

        flops = 2 * n * (64 * 32 + 32 * 4)
        bytes_accessed = (n * (64 * itemsize + 4 + 2 * 4 * 4)
                          + 64 * 32 * 2 + 32 * 4 * 2 + (32 + 4 + 4 + 4) * 4)

        pred, true = pl.pallas_call(
            kernel,
            out_shape=(jax.ShapeDtypeStruct((n, 4), jnp.float32),
                       jax.ShapeDtypeStruct((n, 4), jnp.float32)),
            grid=(num_tiles,),
            in_specs=[
                pl.BlockSpec((tile, 64), lambda i: (i, 0)),       # embs tile (streamed)
                pl.BlockSpec((tile, 1), lambda i: (i, 0)),        # degrees tile
                pl.BlockSpec((64, 32), lambda i: (0, 0)),         # w1 (resident)
                pl.BlockSpec((1, 32), lambda i: (0, 0)),          # b1
                pl.BlockSpec((32, 4), lambda i: (0, 0)),          # w2
                pl.BlockSpec((1, 4), lambda i: (0, 0)),           # b2
                pl.BlockSpec((1, 4), lambda i: (0, 0)),           # lo thresholds
                pl.BlockSpec((1, 4), lambda i: (0, 0)),           # hi thresholds
            ],
            out_specs=(pl.BlockSpec((tile, 4), lambda i: (i, 0)),  # pred_logits
                       pl.BlockSpec((tile, 4), lambda i: (i, 0))), # true_logits
            compiler_params=pltpu.CompilerParams(
                dimension_semantics=("parallel",),
                vmem_limit_bytes=int(vmem_limit)),
            cost_estimate=pl.CostEstimate(
                flops=flops, transcendentals=0, bytes_accessed=bytes_accessed),
        )(embs, d, w1, b1, w2, b2, lo, hi)
        return pred, true

    params = dict(w1=w1, b1=b1, w2=w2, b2=b2, p25=p25, p50=p50, p75=p75)
    return forward, params


def _reference_forward(embs, degrees, params):
    """Pure-JAX reference (same bf16 weight/activation precision as the kernel)."""
    x = embs.astype(jnp.bfloat16)
    h = jnp.maximum(
        jnp.dot(x, params["w1"], preferred_element_type=jnp.float32) + params["b1"],
        0.0)
    pred = jnp.dot(h.astype(jnp.bfloat16), params["w2"],
                   preferred_element_type=jnp.float32) + params["b2"]
    d = degrees.reshape(-1, 1).astype(jnp.float32)
    p25, p50, p75 = params["p25"], params["p50"], params["p75"]
    true = jnp.concatenate([
        (d < p25).astype(jnp.float32),
        ((p25 <= d) & (d < p50)).astype(jnp.float32),
        ((p50 <= d) & (d < p75)).astype(jnp.float32),
        (d >= p75).astype(jnp.float32),
    ], axis=-1)
    return pred, true


if __name__ == "__main__":
    key = jax.random.PRNGKey(0)
    k_deg_all, k_emb, k_deg, k_params = jax.random.split(key, 4)

    # "all_degrees" is only used to compute the percentile thresholds at init.
    all_degrees = np.asarray(
        jax.random.randint(k_deg_all, (256,), 1, 100), dtype=np.float32)

    forward, params = make_degree_discriminator(all_degrees, k_params)

    # N=300 with tile_n=128 exercises a multi-step pipelined grid (3 steps) and
    # the ragged last block (only 44 of its 128 rows are valid) with NO
    # wrapper-side padding or slicing.
    N = 300
    embs = jax.random.normal(k_emb, (N, 64), jnp.float32)
    degrees = jax.random.randint(k_deg, (N,), 1, 100).astype(jnp.float32)

    pred_logits, true_logits = forward(embs, degrees, tile_n=128)
    jax.block_until_ready((pred_logits, true_logits))

    ref_pred, ref_true = _reference_forward(embs, degrees, params)
    assert pred_logits.shape == (N, 4) and true_logits.shape == (N, 4)
    assert jnp.allclose(pred_logits, ref_pred, atol=1e-3, rtol=1e-3)
    assert jnp.allclose(true_logits, ref_true)
    # each row of true_logits is a one-hot bucket label
    assert jnp.allclose(true_logits.sum(axis=-1), 1.0)

    print("KERNEL_OK")
</pallas_src>

<mosaic_0001>
module attributes {stable_mosaic.version = 11 : i64} {
  func.func @kernel(%arg0: i32, %arg1: memref<128x64xf32, #tpu.memory_space<vmem>>, %arg2: memref<128x1xf32, #tpu.memory_space<vmem>>, %arg3: memref<64x32xbf16, #tpu.memory_space<vmem>>, %arg4: memref<1x32xf32, #tpu.memory_space<vmem>>, %arg5: memref<32x4xbf16, #tpu.memory_space<vmem>>, %arg6: memref<1x4xf32, #tpu.memory_space<vmem>>, %arg7: memref<1x4xf32, #tpu.memory_space<vmem>>, %arg8: memref<1x4xf32, #tpu.memory_space<vmem>>, %arg9: memref<128x4xf32, #tpu.memory_space<vmem>>, %arg10: memref<128x4xf32, #tpu.memory_space<vmem>>) attributes {dimension_semantics = [#tpu.dimension_semantics<parallel>], iteration_bounds = array<i64: 3>, scalar_prefetch = 0 : i64, scratch_operands = 0 : i64, tpu.core_type = #tpu.core_type<tc>, window_params = [{transform_indices = @transform_0, window_bounds = array<i64: 128, 64>}, {transform_indices = @transform_1, window_bounds = array<i64: 128, 1>}, {pipeline_mode = #tpu.pipeline_mode<synchronous>, transform_indices = @transform_2, window_bounds = array<i64: 64, 32>}, {pipeline_mode = #tpu.pipeline_mode<synchronous>, transform_indices = @transform_3, window_bounds = array<i64: 1, 32>}, {pipeline_mode = #tpu.pipeline_mode<synchronous>, transform_indices = @transform_4, window_bounds = array<i64: 32, 4>}, {pipeline_mode = #tpu.pipeline_mode<synchronous>, transform_indices = @transform_5, window_bounds = array<i64: 1, 4>}, {pipeline_mode = #tpu.pipeline_mode<synchronous>, transform_indices = @transform_6, window_bounds = array<i64: 1, 4>}, {pipeline_mode = #tpu.pipeline_mode<synchronous>, transform_indices = @transform_7, window_bounds = array<i64: 1, 4>}, {transform_indices = @transform_8, window_bounds = array<i64: 128, 4>}, {transform_indices = @transform_9, window_bounds = array<i64: 128, 4>}]} {
    %c0 = arith.constant 0 : index
    %c0_0 = arith.constant 0 : index
    %0 = vector.load %arg1[%c0, %c0_0] : memref<128x64xf32, #tpu.memory_space<vmem>>, vector<128x64xf32>
    %1 = arith.truncf %0 : vector<128x64xf32> to vector<128x64xbf16>
    %c0_1 = arith.constant 0 : index
    %c0_2 = arith.constant 0 : index
    %2 = vector.load %arg3[%c0_1, %c0_2] : memref<64x32xbf16, #tpu.memory_space<vmem>>, vector<64x32xbf16>
    %cst = arith.constant dense<0.000000e+00> : vector<128x32xf32>
    %3 = tpu.matmul %1, %2, %cst {dimension_numbers = #tpu.dot_dimension_numbers<[1], [0], [0], [1], [0, 0, 1, 1], [], []>} : vector<128x64xbf16>, vector<64x32xbf16>, vector<128x32xf32> -> vector<128x32xf32>
    %c0_3 = arith.constant 0 : index
    %c0_4 = arith.constant 0 : index
    %4 = vector.load %arg4[%c0_3, %c0_4] : memref<1x32xf32, #tpu.memory_space<vmem>>, vector<1x32xf32>
    %5 = vector.broadcast %4 : vector<1x32xf32> to vector<128x32xf32>
    %6 = arith.addf %3, %5 : vector<128x32xf32>
    %cst_5 = arith.constant 0.000000e+00 : f32
    %7 = vector.broadcast %cst_5 : f32 to vector<128x32xf32>
    %8 = arith.maximumf %6, %7 : vector<128x32xf32>
    %9 = arith.truncf %8 : vector<128x32xf32> to vector<128x32xbf16>
    %c0_6 = arith.constant 0 : index
    %c0_7 = arith.constant 0 : index
    %10 = vector.load %arg5[%c0_6, %c0_7] : memref<32x4xbf16, #tpu.memory_space<vmem>>, vector<32x4xbf16>
    %cst_8 = arith.constant dense<0.000000e+00> : vector<128x4xf32>
    %11 = tpu.matmul %9, %10, %cst_8 {dimension_numbers = #tpu.dot_dimension_numbers<[1], [0], [0], [1], [0, 0, 1, 1], [], []>} : vector<128x32xbf16>, vector<32x4xbf16>, vector<128x4xf32> -> vector<128x4xf32>
    %c0_9 = arith.constant 0 : index
    %c0_10 = arith.constant 0 : index
    %12 = vector.load %arg6[%c0_9, %c0_10] : memref<1x4xf32, #tpu.memory_space<vmem>>, vector<1x4xf32>
    %13 = vector.broadcast %12 : vector<1x4xf32> to vector<128x4xf32>
    %14 = arith.addf %11, %13 : vector<128x4xf32>
    %c0_11 = arith.constant 0 : index
    %c0_12 = arith.constant 0 : index
    %15 = vector.load %arg9[%c0_11, %c0_12] : memref<128x4xf32, #tpu.memory_space<vmem>>, vector<128x4xf32>
    tpu.vector_store %arg9[%c0_11, %c0_12], %14 {strides = array<i32>} : memref<128x4xf32, #tpu.memory_space<vmem>>, vector<128x4xf32>,
    %c0_13 = arith.constant 0 : index
    %c0_14 = arith.constant 0 : index
    %16 = vector.load %arg2[%c0_13, %c0_14] : memref<128x1xf32, #tpu.memory_space<vmem>>, vector<128x1xf32>
    %c0_15 = arith.constant 0 : index
    %c0_16 = arith.constant 0 : index
    %17 = vector.load %arg7[%c0_15, %c0_16] : memref<1x4xf32, #tpu.memory_space<vmem>>, vector<1x4xf32>
    %18 = vector.broadcast %16 : vector<128x1xf32> to vector<128x4xf32>
    %19 = vector.broadcast %17 : vector<1x4xf32> to vector<128x4xf32>
    %20 = arith.cmpf oge, %18, %19 : vector<128x4xf32>
    %c0_17 = arith.constant 0 : index
    %c0_18 = arith.constant 0 : index
    %21 = vector.load %arg8[%c0_17, %c0_18] : memref<1x4xf32, #tpu.memory_space<vmem>>, vector<1x4xf32>
    %22 = vector.broadcast %16 : vector<128x1xf32> to vector<128x4xf32>
    %23 = vector.broadcast %21 : vector<1x4xf32> to vector<128x4xf32>
    %24 = arith.cmpf olt, %22, %23 : vector<128x4xf32>
    %25 = arith.andi %20, %24 : vector<128x4xi1>
    %26 = arith.extui %25 : vector<128x4xi1> to vector<128x4xi32>
    %27 = arith.sitofp %26 : vector<128x4xi32> to vector<128x4xf32>
    %c0_19 = arith.constant 0 : index
    %c0_20 = arith.constant 0 : index
    %28 = vector.load %arg10[%c0_19, %c0_20] : memref<128x4xf32, #tpu.memory_space<vmem>>, vector<128x4xf32>
    tpu.vector_store %arg10[%c0_19, %c0_20], %27 {strides = array<i32>} : memref<128x4xf32, #tpu.memory_space<vmem>>, vector<128x4xf32>,
    return
  }
  func.func @transform_0(%arg0: i32) -> (i32, i32) {
    %c0_i32 = arith.constant 0 : i32
    %c0_i32_0 = arith.constant 0 : i32
    return %arg0, %c0_i32 : i32, i32
  }
  func.func @transform_1(%arg0: i32) -> (i32, i32) {
    %c0_i32 = arith.constant 0 : i32
    %c0_i32_0 = arith.constant 0 : i32
    return %arg0, %c0_i32 : i32, i32
  }
  func.func @transform_2(%arg0: i32) -> (i32, i32) {
    %c0_i32 = arith.constant 0 : i32
    %c0_i32_0 = arith.constant 0 : i32
    %c0_i32_1 = arith.constant 0 : i32
    return %c0_i32, %c0_i32_0 : i32, i32
  }
  func.func @transform_3(%arg0: i32) -> (i32, i32) {
    %c0_i32 = arith.constant 0 : i32
    %c0_i32_0 = arith.constant 0 : i32
    %c0_i32_1 = arith.constant 0 : i32
    return %c0_i32, %c0_i32_0 : i32, i32
  }
  func.func @transform_4(%arg0: i32) -> (i32, i32) {
    %c0_i32 = arith.constant 0 : i32
    %c0_i32_0 = arith.constant 0 : i32
    %c0_i32_1 = arith.constant 0 : i32
    return %c0_i32, %c0_i32_0 : i32, i32
  }
  func.func @transform_5(%arg0: i32) -> (i32, i32) {
    %c0_i32 = arith.constant 0 : i32
    %c0_i32_0 = arith.constant 0 : i32
    %c0_i32_1 = arith.constant 0 : i32
    return %c0_i32, %c0_i32_0 : i32, i32
  }
  func.func @transform_6(%arg0: i32) -> (i32, i32) {
    %c0_i32 = arith.constant 0 : i32
    %c0_i32_0 = arith.constant 0 : i32
    %c0_i32_1 = arith.constant 0 : i32
    return %c0_i32, %c0_i32_0 : i32, i32
  }
  func.func @transform_7(%arg0: i32) -> (i32, i32) {
    %c0_i32 = arith.constant 0 : i32
    %c0_i32_0 = arith.constant 0 : i32
    %c0_i32_1 = arith.constant 0 : i32
    return %c0_i32, %c0_i32_0 : i32, i32
  }
  func.func @transform_8(%arg0: i32) -> (i32, i32) {
    %c0_i32 = arith.constant 0 : i32
    %c0_i32_0 = arith.constant 0 : i32
    return %arg0, %c0_i32 : i32, i32
  }
  func.func @transform_9(%arg0: i32) -> (i32, i32) {
    %c0_i32 = arith.constant 0 : i32
    %c0_i32_0 = arith.constant 0 : i32
    return %arg0, %c0_i32 : i32, i32
  }
}

</mosaic_0001>

<bundles_post_ra>
// kernel: tpu_custom_call.1
= control target key start
LH: loop header
LB: loop body
LE: loop exit
PB: predicated region body
PF: predicated region fallthrough
CT: control target
= control target key end

     0   :  { %s2391_s0 = inlined_call_operand.vmem [shape: f32[300,64], index: 0, kind: input, shape index: {}]   ;;  %s2392_s1 = inlined_call_operand.vmem [shape: f32[300,1], index: 1, kind: input, shape index: {}]   ;;  %s2393_s2 = inlined_call_operand.vmem [shape: bf16[64,32], index: 2, kind: input, shape index: {}]   ;;  %s2394_s3 = inlined_call_operand.vmem [shape: f32[1,32], index: 3, kind: input, shape index: {}]   ;;  %s2395_s4 = inlined_call_operand.vmem [shape: bf16[32,4], index: 4, kind: input, shape index: {}]   ;;  %s2396_s5 = inlined_call_operand.vmem [shape: f32[1,4], index: 5, kind: input, shape index: {}]   ;;  %s2397_s6 = inlined_call_operand.vmem [shape: f32[1,4], index: 6, kind: input, shape index: {}]   ;;  %s2398_s7 = inlined_call_operand.vmem [shape: f32[1,4], index: 7, kind: input, shape index: {}]   ;;  %s2399_s8 = inlined_call_operand.vmem [shape: f32[300,4], index: 8, kind: output, shape index: {0}]   ;;  %s2400_s9 = inlined_call_operand.vmem [shape: f32[300,4], index: 9, kind: output, shape index: {1}]  }
   0x1   :  { %2401 = sst [smem:[#allocation4_spill]] %s2391_s0 }
   0x2   :  { %2402 = sst [smem:[#allocation5_spill]] %s2392_s1 }
   0x3   :  { %s1900_s30 = smov 0   ;;  %s1902_s10 = smov 0  }
   0x4   :  { %s1904_s11 = smov 0  }
   0x5 LB: > { %s1913_s12 = sadd.s32 4294967295, %s1782_s11   ;;  %s1915_s13 = sadd.s32 1, %s1782_s11   ;;  %s1782_s11 = sphi %s1904_s11, %s2418_s11   ;;  %s1778_s10 = sphi %s1902_s10, %s2417_s10   ;;  %s1774_s30 = sphi %s1900_s30, %s2416_s30  }
   0x6   : > { %s202_s14 = ssub.s32 %s1782_s11, %s1915_s13  ;;  %s205_s15 = sadd.s32 1, %s1778_s10 }
   0x7   : > { %p203_p0 = scmp.eq.s32.totalorder %s202_s14, 0  ;;  %p215_p1 = scmp.ne.s32.totalorder %s1778_s10, %s1774_s30 }
   0x8   : > { %p216_p2 = scmp.eq.s32.totalorder %s1913_s12, 2  ;;  %p1422_p3 = scmp.ge.s32.totalorder %s1782_s11, 1 }
   0x9   : > { %s1923_s16 = scalar_select %p203_p0, %s1778_s10, %s205_s15  }
   0xa   : > { %p1925_p4 = por %p216_p2, %p215_p1  ;;  %p318_p5 = scmp.lt.s32.totalorder %s1782_s11, 4 }
   0xc   : > { %p319_p6 = pnand %p1422_p3, %p318_p5 }
   0xd   : > { %s1933_s20 = sshll.u32 (!%p319_p6), %s1913_s12, 4  ;;  %s2404_s0 = sld [smem:[#allocation4_spill]] (!%p319_p6) }
   0xe   : > { %322 = sbr.rel (%p319_p6) target bundleno = 477 (0x1dd), region = 52  ;;  %p375_p7 = scmp.lt.s32.totalorder (!%p319_p6), %s1933_s20, 37 }
   0xf   : > { %s2405_s1 = sld [smem:[#allocation5_spill]] (!%p319_p6)  ;;  %s361_s14 = sand.u32 (!%p319_p6), 1, %s1774_s30  }
  0x10   : > { %s2052_s15 = sshll.u32 (!%p319_p6), %s361_s14, 7 }
  0x11   : > { %s2058_s18 = scalar_lea.vmem (!%p319_p6), [#allocation3], %s2052_s15   ;;  %s2126_s21 = scalar_lea.vmem (!%p319_p6), [#allocation2], %s2052_s15  }
  0x13   : > { %v1520_v0 = vld [vmem:[%s2393_s2 + $0x18] sm:$0xff]  ;;  %v1519_v1 = vld [vmem:[%s2393_s2 + $0x10] sm:$0xff]  ;;  %s1940_s23 = scalar_select %p375_p7, %s1933_s20, 37  ;;  %v1518_v2 = vld [vmem:[%s2393_s2 + $0x8] sm:$0xff]  ;;  %vm469_vm0 = vcmask 523264   ;;  %v1848_v30 = vmov 0  }
  0x14   : > { %498 = vmatpush.bf16.msra.mxu0 %v1520_v0  ;;  %1529 = vmatpush.bf16.msra.mxu2 %v1520_v0  ;;  %v1517_v3 = vld [vmem:[%s2393_s2] sm:$0xff]  ;;  %v1522_v28 = vld [vmem:[%s2395_s4 + $0x8] sm:$0xff]  ;;  %vm587_vm1 = vcmask 261120   ;;  %vm661_vm5 = vcmask 31744   ;;  %s890_s22 = ssub.s32 (%p1925_p4), 38, %s1933_s20  ;;  %s1523_s25 = sshll.u32 (%p1925_p4), %s1913_s12, 7 }
  0x15   : > { %s1426_s24 = sshll.u32 %s1940_s23, 3  ;;  %618 = vmatpush.bf16.msra.mxu1 %v1522_v28  ;;  %1533 = vmatpush.bf16.msra.mxu3 %v1522_v28  ;;  %v1521_v29 = vld [vmem:[%s2395_s4] sm:$0xff]  ;;  %p891_p8 = scmp.lt.s32.totalorder (%p1925_p4), %s890_s22, 16 }
  0x16   : > { %s1951_s29 = scalar_lea.vmem %s2404_s0, %s1426_s24  ;;  %s1991_s26 = scalar_lea.vmem %s2405_s1, %s1426_s24  ;;  %1689 = vset.pattern.permute.xlu0 %v1848_v30  ;;  %1690 = vset.pattern.permute.xlu1 %v1848_v30  ;;  %v2000_v36 = vld [vmem:[%s2394_s3] ss:$0 sm:$0xff] }
  0x17   : > { %v409_v4 = vld [vmem:[%s1951_s29] sm:$0xff]  ;;  %v410_v5 = vld [vmem:[%s1951_s29 + $0x8] sm:$0xff]  ;;  %v411_v10 = vld [vmem:[%s1951_s29 + $0x10] sm:$0xff]  ;;  %1691 = vset.pattern.permute.xlu2 %v1848_v30  ;;  %s2200_s24 = scalar_lea.vmem (%p1925_p4), %s2399_s8, %s1523_s25  }
  0x18   : > { %499 = vmatpush.bf16.msra.mxu0 %v1519_v1  ;;  %1530 = vmatpush.bf16.msra.mxu2 %v1519_v1  ;;  %v417_v6 = vld [vmem:[%s1951_s29 + $0x40] sm:$0xff]  ;;  %v418_v7 = vld [vmem:[%s1951_s29 + $0x48] sm:$0xff]  ;;  %v425_v8 = vpack.c.bf16 %v410_v5, %v409_v4  ;;  %v412_v11 = vld [vmem:[%s1951_s29 + $0x18] sm:$0xff] }
  0x19   : > { %v429_v9 = vpack.c.bf16 %v418_v7, %v417_v6  ;;  %v419_v12 = vld [vmem:[%s1951_s29 + $0x50] sm:$0xff]  ;;  %v420_v13 = vld [vmem:[%s1951_s29 + $0x58] sm:$0xff]  ;;  %v426_v14 = vpack.c.bf16 %v412_v11, %v411_v10  ;;  %v413_v16 = vld [vmem:[%s1951_s29 + $0x20] sm:$0xff]  ;;  %619 = vmatpush.bf16.msra.mxu1 %v1521_v29  ;;  %1534 = vmatpush.bf16.msra.mxu3 %v1521_v29 }
  0x1a   : > { %v430_v15 = vpack.c.bf16 %v420_v13, %v419_v12  ;;  %v414_v17 = vld [vmem:[%s1951_s29 + $0x28] sm:$0xff]  ;;  %v421_v18 = vld [vmem:[%s1951_s29 + $0x60] sm:$0xff]  ;;  %v415_v22 = vld [vmem:[%s1951_s29 + $0x30] sm:$0xff] }
  0x1b   : > { %v422_v19 = vld [vmem:[%s1951_s29 + $0x68] sm:$0xff]  ;;  %v427_v20 = vpack.c.bf16 %v414_v17, %v413_v16  ;;  %v416_v23 = vld [vmem:[%s1951_s29 + $0x38] sm:$0xff]  ;;  %v423_v24 = vld [vmem:[%s1951_s29 + $0x70] sm:$0xff] }
  0x1c   : > { %500 = vmatpush.bf16.msra.mxu0 %v1518_v2  ;;  %1531 = vmatpush.bf16.msra.mxu2 %v1518_v2  ;;  %v431_v21 = vpack.c.bf16 %v422_v19, %v421_v18  ;;  %v424_v25 = vld [vmem:[%s1951_s29 + $0x78] sm:$0xff]  ;;  %v428_v26 = vpack.c.bf16 %v416_v23, %v415_v22  ;;  %v678_v31 = vld [vmem:[%s1991_s26] sm:$0xff]  ;;  %v679_v32 = vld [vmem:[%s1991_s26 + $0x8] sm:$0xff] }
  0x1d   : > { %v432_v27 = vpack.c.bf16 %v424_v25, %v423_v24  ;;  %697 = vperm.xlu0 %1689, %v678_v31   ;;  %v680_v34 = vld [vmem:[%s1991_s26 + $0x10] sm:$0xff]  ;;  %v681_v41 = vld [vmem:[%s1991_s26 + $0x18] sm:$0xff]  ;;  %v687_v42 = vld [vmem:[%s1991_s26 + $0x48] sm:$0xff] }
  0x1e   : > { %v684_v35 = vld [vmem:[%s1991_s26 + $0x30] sm:$0xff]  ;;  %707 = vperm.xlu1 %1690, %v680_v34   ;;  %v685_v50 = vld [vmem:[%s1991_s26 + $0x38] sm:$0xff]  ;;  %v690_v51 = vld [vmem:[%s1991_s26 + $0x60] sm:$0xff] }
  0x1f   : > { %v682_v58 = vld [vmem:[%s1991_s26 + $0x20] sm:$0xff]  ;;  %v688_v59 = vld [vmem:[%s1991_s26 + $0x50] sm:$0xff]  ;;  %v693_v60 = vld [vmem:[%s1991_s26 + $0x78] sm:$0xff] }
  0x20   : > { %501 = vmatpush.bf16.msra.mxu0 %v1517_v3  ;;  %1532 = vmatpush.bf16.msra.mxu2 %v1517_v3  ;;  %v683_v5 = vld [vmem:[%s1991_s26 + $0x28] sm:$0xff]  ;;  %v686_v11 = vld [vmem:[%s1991_s26 + $0x40] sm:$0xff] }
  0x21   : > { %717 = vperm.xlu2 %1691, %v682_v58   ;;  %v691_v6 = vld [vmem:[%s1991_s26 + $0x68] sm:$0xff] }
  0x23   : > { %1445 = vmatmul.msk.bf16.vlgmr.msra.gmra.mxu0 %vm469_vm0, %v425_v8  ;;  %1449 = vmatmul.msk.bf16.vlgmr.msra.gmra.mxu2 %vm469_vm0, %v429_v9 }
  0x25   : > { %702 = vperm.xlu0 %1689, %v679_v32  }
  0x26   : > { %712 = vperm.xlu1 %1690, %v681_v41   ;;  %v2044_v41 = vld [vmem:[%s2397_s6] ss:$0 sm:$0xff] }
  0x29   : > { %722 = vperm.xlu2 %1691, %v683_v5  }
  0x2d   : > { %727 = vperm.xlu0 %1689, %v684_v35  }
  0x2e   : > { %732 = vperm.xlu1 %1690, %v685_v50  }
  0x31   : > { %737 = vperm.xlu2 %1691, %v686_v11  }
  0x33   : > { %1446 = vmatmul.msk.bf16.gmra.mxu0 %vm469_vm0, %v426_v14  ;;  %1450 = vmatmul.msk.bf16.gmra.mxu2 %vm469_vm0, %v430_v15 }
  0x35   : > { %742 = vperm.xlu0 %1689, %v687_v42   ;;  %v2049_v42 = vld [vmem:[%s2398_s7] ss:$0 sm:$0xff] }
  0x36   : > { %747 = vperm.xlu1 %1690, %v688_v59  }
  0x3d   : > { %757 = vperm.xlu0 %1689, %v690_v51  }
  0x3e   : > { %762 = vperm.xlu1 %1690, %v691_v6  }
  0x43   : > { %1447 = vmatmul.msk.bf16.gmra.mxu0 %vm469_vm0, %v427_v20  ;;  %1451 = vmatmul.msk.bf16.gmra.mxu2 %vm469_vm0, %v431_v21  ;;  %v689_v21 = vld [vmem:[%s1991_s26 + $0x58] sm:$0xff] }
  0x44   : > { %752 = vperm.xlu2 %1691, %v689_v21  }
  0x45   : > { %772 = vperm.xlu0 %1689, %v693_v60  }
  0x53   : > { %1448 = vmatmul.msk.bf16.gmra.mxu0 %vm469_vm0, %v428_v26  ;;  %1452 = vmatmul.msk.bf16.gmra.mxu2 %vm469_vm0, %v432_v27  ;;  %v692_v27 = vld [vmem:[%s1991_s26 + $0x70] sm:$0xff] }
  0x54   : > { %767 = vperm.xlu2 %1691, %v692_v27  }
  0xa0   : > { %v503_v33 = vpop.f32.mrf.mxu0 }
  0xa1   : > { %v504_v38 = vadd.f32 %v2000_v36, %v503_v33 }
  0xa3   : > { %v543_v44 = vmax.f32 %v504_v38, 0.0 }
  0xa6   : > { %v523_v37 = vpop.f32.mrf.mxu2 }
  0xa7   : > { %v524_v39 = vadd.f32 %v2000_v36, %v523_v37 }
  0xa8   : > { %v505_v40 = vpop.f32.mrf.mxu0 }
  0xa9   : > { %v506_v43 = vadd.f32 %v2000_v36, %v505_v40  ;;  %v551_v52 = vmax.f32 %v524_v39, 0.0 }
  0xab   : > { %v544_v45 = vmax.f32 %v506_v43, 0.0  ;;  %v1849_v43 = vmov 0.0  }
  0xad   : > { %v559_v46 = vpack.c.bf16 %v544_v45, %v543_v44 }
  0xae   : > { %v525_v47 = vpop.f32.mrf.mxu2 }
  0xaf   : > { %v526_v48 = vadd.f32 %v2000_v36, %v525_v47  ;;  %1461 = vmatmul.msk.bf16.vlgmr.msra.gmra.mxu1 %vm587_vm1, %v559_v46  ;;  %v718_v47 = vpop.permute.xlu2 %717 }
  0xb0   : > { %v508_v49 = vpop.f32.mrf.mxu0  ;;  %vm782_vm9 = vcmp.ge.f32.partialorder %v718_v47, %v2044_v41  ;;  %vm802_vm10 = vcmp.lt.f32.partialorder %v718_v47, %v2049_v42 }
  0xb1   : > { %v552_v53 = vmax.f32 %v526_v48, 0.0  ;;  %v509_v56 = vadd.f32 %v2000_v36, %v508_v49  ;;  %v708_v48 = vpop.permute.xlu1 %707  ;;  %vm818_vm13 = vmand %vm782_vm9, %vm802_vm10 }
  0xb2   : > { %vm780_vm11 = vcmp.ge.f32.partialorder %v708_v48, %v2044_v41  ;;  %vm800_vm12 = vcmp.lt.f32.partialorder %v708_v48, %v2049_v42  ;;  %v1473_v50 = vsel %vm818_vm13, 1.0, %v1849_v43 }
  0xb3   : > { %v2011_v54 = vpack.c.bf16 %v552_v53, %v551_v52  ;;  %v545_v62 = vmax.f32 %v509_v56, 0.0  ;;  %vm816_vm0 = vmand %vm780_vm11, %vm800_vm12  ;;  %866 = vst.msk [vmem:[%s2058_s18 + $0x20] sm:$0xff] %vm661_vm5, %v1473_v50 }
  0xb4   : > { %v1471_v51 = vsel %vm816_vm0, 1.0, %v1849_v43 }
  0xb5   : > { %864 = vst.msk [vmem:[%s2058_s18 + $0x10] sm:$0xff] %vm661_vm5, %v1471_v51 }
  0xb6   : > { %v528_v55 = vpop.f32.mrf.mxu2 }
  0xb7   : > { %v529_v0 = vadd.f32 %v2000_v36, %v528_v55  ;;  %v723_v53 = vpop.permute.xlu2 %722 }
  0xb8   : > { %v510_v57 = vpop.f32.mrf.mxu0 }
  0xb9   : > { %v511_v61 = vadd.f32 %v2000_v36, %v510_v57  ;;  %v553_v7 = vmax.f32 %v529_v0, 0.0 }
  0xbb   : > { %v546_v63 = vmax.f32 %v511_v61, 0.0 }
  0xbd   : > { %v560_v1 = vpack.c.bf16 %v546_v63, %v545_v62 }
  0xbe   : > { %v530_v2 = vpop.f32.mrf.mxu2 }
  0xbf   : > { %v531_v3 = vadd.f32 %v2000_v36, %v530_v2  ;;  %1462 = vmatmul.msk.bf16.gmra.mxu1 %vm587_vm1, %v560_v1  ;;  %v738_v59 = vpop.permute.xlu2 %737  ;;  %v2113_v1 = vld [vmem:[%s2396_s5] ss:$0 sm:$0xff] }
  0xc0   : > { %v513_v4 = vpop.f32.mrf.mxu0  ;;  %vm786_vm12 = vcmp.ge.f32.partialorder %v738_v59, %v2044_v41  ;;  %vm806_vm13 = vcmp.lt.f32.partialorder %v738_v59, %v2049_v42 }
  0xc1   : > { %v554_v8 = vmax.f32 %v531_v3, 0.0  ;;  %v514_v12 = vadd.f32 %v2000_v36, %v513_v4  ;;  %vm822_vm0 = vmand %vm786_vm12, %vm806_vm13 }
  0xc2   : > { %v1477_v62 = vsel %vm822_vm0, 1.0, %v1849_v43 }
  0xc3   : > { %v564_v9 = vpack.c.bf16 %v554_v8, %v553_v7  ;;  %v547_v15 = vmax.f32 %v514_v12, 0.0  ;;  %870 = vst.msk [vmem:[%s2058_s18 + $0x40] sm:$0xff] %vm661_vm5, %v1477_v62 }
  0xc5   : > { %1466 = vmatmul.msk.bf16.vlgmr.msra.gmra.mxu3 %vm587_vm1, %v564_v9 }
  0xc6   : > { %v533_v10 = vpop.f32.mrf.mxu2 }
  0xc7   : > { %v534_v17 = vadd.f32 %v2000_v36, %v533_v10  ;;  %v753_v2 = vpop.permute.xlu2 %752 }
  0xc8   : > { %v515_v13 = vpop.f32.mrf.mxu0 }
  0xc9   : > { %v516_v14 = vadd.f32 %v2000_v36, %v515_v13  ;;  %v555_v23 = vmax.f32 %v534_v17, 0.0 }
  0xcb   : > { %v548_v16 = vmax.f32 %v516_v14, 0.0 }
  0xcd   : > { %v561_v18 = vpack.c.bf16 %v548_v16, %v547_v15 }
  0xce   : > { %v535_v19 = vpop.f32.mrf.mxu2 }
  0xcf   : > { %v536_v20 = vadd.f32 %v2000_v36, %v535_v19  ;;  %1463 = vmatmul.msk.bf16.gmra.mxu1 %vm587_vm1, %v561_v18  ;;  %v768_v10 = vpop.permute.xlu2 %767 }
  0xd0   : > { %v518_v22 = vpop.f32.mrf.mxu0  ;;  %vm812_vm0 = vcmp.lt.f32.partialorder %v768_v10, %v2049_v42 }
  0xd1   : > { %v556_v24 = vmax.f32 %v536_v20, 0.0  ;;  %v519_v28 = vadd.f32 %v2000_v36, %v518_v22 }
  0xd3   : > { %v565_v25 = vpack.c.bf16 %v556_v24, %v555_v23  ;;  %v549_v31 = vmax.f32 %v519_v28, 0.0 }
  0xd5   : > { %1467 = vmatmul.msk.bf16.gmra.mxu3 %vm587_vm1, %v565_v25 }
  0xd6   : > { %v538_v26 = vpop.f32.mrf.mxu2 }
  0xd7   : > { %v539_v33 = vadd.f32 %v2000_v36, %v538_v26 }
  0xd8   : > { %v520_v29 = vpop.f32.mrf.mxu0 }
  0xd9   : > { %v521_v30 = vadd.f32 %v2000_v36, %v520_v29  ;;  %v557_v38 = vmax.f32 %v539_v33, 0.0 }
  0xdb   : > { %v550_v32 = vmax.f32 %v521_v30, 0.0 }
  0xdd   : > { %v562_v34 = vpack.c.bf16 %v550_v32, %v549_v31 }
  0xde   : > { %v540_v35 = vpop.f32.mrf.mxu2 }
  0xdf   : > { %v541_v37 = vadd.f32 %v2000_v36, %v540_v35  ;;  %1464 = vmatmul.msk.bf16.gmra.mxu1 %vm587_vm1, %v562_v34  ;;  %v698_v36 = vpop.permute.xlu0 %697 }
  0xe0   : > { %vm778_vm2 = vcmp.ge.f32.partialorder %v698_v36, %v2044_v41  ;;  %vm798_vm3 = vcmp.lt.f32.partialorder %v698_v36, %v2049_v42 }
  0xe1   : > { %v558_v39 = vmax.f32 %v541_v37, 0.0  ;;  %vm814_vm4 = vmand %vm778_vm2, %vm798_vm3  ;;  %vm783_vm2 = vcmp.ge.f32.partialorder %v723_v53, %v2044_v41  ;;  %vm803_vm3 = vcmp.lt.f32.partialorder %v723_v53, %v2049_v42 }
  0xe2   : > { %v1469_v44 = vsel %vm814_vm4, 1.0, %v1849_v43 }
  0xe3   : > { %v566_v40 = vpack.c.bf16 %v558_v39, %v557_v38  ;;  %862 = vst.msk [vmem:[%s2058_s18] sm:$0xff] %vm661_vm5, %v1469_v44 }
  0xe5   : > { %1468 = vmatmul.msk.bf16.gmra.mxu3 %vm587_vm1, %v566_v40 }
  0xe7   : > { %v703_v45 = vpop.permute.xlu0 %702 }
  0xe8   : > { %vm779_vm6 = vcmp.ge.f32.partialorder %v703_v45, %v2044_v41  ;;  %vm799_vm7 = vcmp.lt.f32.partialorder %v703_v45, %v2049_v42 }
  0xe9   : > { %vm815_vm8 = vmand %vm779_vm6, %vm799_vm7 }
  0xea   : > { %v1470_v46 = vsel %vm815_vm8, 1.0, %v1849_v43  ;;  %vm819_vm7 = vmand %vm783_vm2, %vm803_vm3 }
  0xeb   : > { %863 = vst.msk [vmem:[%s2058_s18 + $0x8] sm:$0xff] %vm661_vm5, %v1470_v46  ;;  %v1474_v56 = vsel %vm819_vm7, 1.0, %v1849_v43  ;;  %vm809_vm7 = vcmp.lt.f32.partialorder %v753_v2, %v2049_v42 }
  0xec   : > { %867 = vst.msk [vmem:[%s2058_s18 + $0x28] sm:$0xff] %vm661_vm5, %v1474_v56 }
  0xef   : > { %1465 = vmatmul.msk.bf16.gmra.mxu1 %vm587_vm1, %v2011_v54  ;;  %v728_v49 = vpop.permute.xlu0 %727  ;;  %v713_v54 = vpop.permute.xlu1 %712 }
  0xf0   : > { %vm784_vm14 = vcmp.ge.f32.partialorder %v728_v49, %v2044_v41  ;;  %vm804_vm15 = vcmp.lt.f32.partialorder %v728_v49, %v2049_v42  ;;  %vm781_vm4 = vcmp.ge.f32.partialorder %v713_v54, %v2044_v41  ;;  %vm801_vm6 = vcmp.lt.f32.partialorder %v713_v54, %v2049_v42 }
  0xf1   : > { %vm820_vm1 = vmand %vm784_vm14, %vm804_vm15 }
  0xf2   : > { %v1475_v52 = vsel %vm820_vm1, 1.0, %v1849_v43  ;;  %vm817_vm10 = vmand %vm781_vm4, %vm801_vm6  ;;  %vm789_vm6 = vcmp.ge.f32.partialorder %v753_v2, %v2044_v41 }
  0xf3   : > { %868 = vst.msk [vmem:[%s2058_s18 + $0x30] sm:$0xff] %vm661_vm5, %v1475_v52  ;;  %v1472_v57 = vsel %vm817_vm10, 1.0, %v1849_v43  ;;  %vm825_vm10 = vmand %vm789_vm6, %vm809_vm7 }
  0xf4   : > { %865 = vst.msk [vmem:[%s2058_s18 + $0x18] sm:$0xff] %vm661_vm5, %v1472_v57  ;;  %v1480_v7 = vsel %vm825_vm10, 1.0, %v1849_v43 }
  0xf5   : > { %873 = vst.msk [vmem:[%s2058_s18 + $0x58] sm:$0xff] %vm661_vm5, %v1480_v7 }
  0xf7   : > { %v743_v55 = vpop.permute.xlu0 %742  ;;  %v733_v60 = vpop.permute.xlu1 %732 }
  0xf8   : > { %vm787_vm8 = vcmp.ge.f32.partialorder %v743_v55, %v2044_v41  ;;  %vm807_vm9 = vcmp.lt.f32.partialorder %v743_v55, %v2049_v42  ;;  %vm785_vm14 = vcmp.ge.f32.partialorder %v733_v60, %v2044_v41  ;;  %vm805_vm15 = vcmp.lt.f32.partialorder %v733_v60, %v2049_v42 }
  0xf9   : > { %vm823_vm11 = vmand %vm787_vm8, %vm807_vm9 }
  0xfa   : > { %v1478_v58 = vsel %vm823_vm11, 1.0, %v1849_v43  ;;  %vm821_vm3 = vmand %vm785_vm14, %vm805_vm15  ;;  %vm792_vm15 = vcmp.ge.f32.partialorder %v768_v10, %v2044_v41 }
  0xfb   : > { %871 = vst.msk [vmem:[%s2058_s18 + $0x48] sm:$0xff] %vm661_vm5, %v1478_v58  ;;  %v1476_v63 = vsel %vm821_vm3, 1.0, %v1849_v43  ;;  %vm828_vm3 = vmand %vm792_vm15, %vm812_vm0 }
  0xfc   : > { %869 = vst.msk [vmem:[%s2058_s18 + $0x38] sm:$0xff] %vm661_vm5, %v1476_v63  ;;  %v1483_v14 = vsel %vm828_vm3, 1.0, %v1849_v43 }
  0xfd   : > { %876 = vst.msk [vmem:[%s2058_s18 + $0x70] sm:$0xff] %vm661_vm5, %v1483_v14 }
  0xff   : > { %v758_v61 = vpop.permute.xlu0 %757  ;;  %v748_v3 = vpop.permute.xlu1 %747 }
 0x100   : > { %vm790_vm1 = vcmp.ge.f32.partialorder %v758_v61, %v2044_v41  ;;  %vm810_vm2 = vcmp.lt.f32.partialorder %v758_v61, %v2049_v42  ;;  %vm788_vm8 = vcmp.ge.f32.partialorder %v748_v3, %v2044_v41  ;;  %vm808_vm9 = vcmp.lt.f32.partialorder %v748_v3, %v2049_v42 }
 0x101   : > { %vm826_vm4 = vmand %vm790_vm1, %vm810_vm2 }
 0x102   : > { %v1481_v0 = vsel %vm826_vm4, 1.0, %v1849_v43  ;;  %vm824_vm13 = vmand %vm788_vm8, %vm808_vm9 }
 0x103   : > { %874 = vst.msk [vmem:[%s2058_s18 + $0x60] sm:$0xff] %vm661_vm5, %v1481_v0  ;;  %v1479_v8 = vsel %vm824_vm13, 1.0, %v1849_v43 }
 0x104   : > { %872 = vst.msk [vmem:[%s2058_s18 + $0x50] sm:$0xff] %vm661_vm5, %v1479_v8 }
 0x107   : > { %v773_v5 = vpop.permute.xlu0 %772  ;;  %v763_v11 = vpop.permute.xlu1 %762 }
 0x108   : > { %vm793_vm11 = vcmp.ge.f32.partialorder %v773_v5, %v2044_v41  ;;  %vm813_vm12 = vcmp.lt.f32.partialorder %v773_v5, %v2049_v42  ;;  %vm791_vm1 = vcmp.ge.f32.partialorder %v763_v11, %v2044_v41  ;;  %vm811_vm2 = vcmp.lt.f32.partialorder %v763_v11, %v2049_v42 }
 0x109   : > { %vm829_vm14 = vmand %vm793_vm11, %vm813_vm12 }
 0x10a   : > { %v1484_v9 = vsel %vm829_vm14, 1.0, %v1849_v43  ;;  %vm827_vm4 = vmand %vm791_vm1, %vm811_vm2 }
 0x10b   : > { %877 = vst.msk [vmem:[%s2058_s18 + $0x78] sm:$0xff] %vm661_vm5, %v1484_v9  ;;  %v1482_v15 = vsel %vm827_vm4, 1.0, %v1849_v43 }
 0x10c   : > { %875 = vst.msk [vmem:[%s2058_s18 + $0x68] sm:$0xff] %vm661_vm5, %v1482_v15 }
 0x12c   : > { %v621_v4 = vpop.f32.mrf.mxu1 }
 0x12d   : > { %v622_v6 = vadd.f32 %v2113_v1, %v621_v4 }
 0x12f   : > { %662 = vst.msk [vmem:[%s2126_s21] sm:$0xff] %vm661_vm5, %v622_v6 }
 0x134   : > { %v623_v12 = vpop.f32.mrf.mxu1 }
 0x135   : > { %v624_v13 = vadd.f32 %v2113_v1, %v623_v12 }
 0x137   : > { %663 = vst.msk [vmem:[%s2126_s21 + $0x8] sm:$0xff] %vm661_vm5, %v624_v13 }
 0x13c   : > { %v626_v16 = vpop.f32.mrf.mxu1 }
 0x13d   : > { %v627_v17 = vadd.f32 %v2113_v1, %v626_v16 }
 0x13f   : > { %664 = vst.msk [vmem:[%s2126_s21 + $0x10] sm:$0xff] %vm661_vm5, %v627_v17 }
 0x144   : > { %v628_v18 = vpop.f32.mrf.mxu1 }
 0x145   : > { %v629_v19 = vadd.f32 %v2113_v1, %v628_v18 }
 0x147   : > { %665 = vst.msk [vmem:[%s2126_s21 + $0x18] sm:$0xff] %vm661_vm5, %v629_v19 }
 0x148   : > { %v646_v20 = vpop.f32.mrf.mxu3 }
 0x149   : > { %v647_v21 = vadd.f32 %v2113_v1, %v646_v20 }
 0x14b   : > { %672 = vst.msk [vmem:[%s2126_s21 + $0x50] sm:$0xff] %vm661_vm5, %v647_v21 }
 0x14c   : > { %v631_v22 = vpop.f32.mrf.mxu1 }
 0x14d   : > { %v632_v23 = vadd.f32 %v2113_v1, %v631_v22 }
 0x14f   : > { %666 = vst.msk [vmem:[%s2126_s21 + $0x20] sm:$0xff] %vm661_vm5, %v632_v23 }
 0x150   : > { %v648_v24 = vpop.f32.mrf.mxu3 }
 0x151   : > { %v649_v25 = vadd.f32 %v2113_v1, %v648_v24 }
 0x153   : > { %673 = vst.msk [vmem:[%s2126_s21 + $0x58] sm:$0xff] %vm661_vm5, %v649_v25 }
 0x154   : > { %v633_v26 = vpop.f32.mrf.mxu1 }
 0x155   : > { %v634_v27 = vadd.f32 %v2113_v1, %v633_v26 }
 0x157   : > { %667 = vst.msk [vmem:[%s2126_s21 + $0x28] sm:$0xff] %vm661_vm5, %v634_v27 }
 0x158   : > { %v651_v28 = vpop.f32.mrf.mxu3 }
 0x159   : > { %v652_v29 = vadd.f32 %v2113_v1, %v651_v28 }
 0x15b   : > { %674 = vst.msk [vmem:[%s2126_s21 + $0x60] sm:$0xff] %vm661_vm5, %v652_v29 }
 0x15c   : > { %v636_v30 = vpop.f32.mrf.mxu1 }
 0x15d   : > { %v637_v31 = vadd.f32 %v2113_v1, %v636_v30 }
 0x15f   : > { %668 = vst.msk [vmem:[%s2126_s21 + $0x30] sm:$0xff] %vm661_vm5, %v637_v31 }
 0x160   : > { %v653_v32 = vpop.f32.mrf.mxu3 }
 0x161   : > { %v654_v33 = vadd.f32 %v2113_v1, %v653_v32 }
 0x163   : > { %675 = vst.msk [vmem:[%s2126_s21 + $0x68] sm:$0xff] %vm661_vm5, %v654_v33 }
 0x164   : > { %v638_v34 = vpop.f32.mrf.mxu1 }
 0x165   : > { %v639_v35 = vadd.f32 %v2113_v1, %v638_v34 }
 0x167   : > { %669 = vst.msk [vmem:[%s2126_s21 + $0x38] sm:$0xff] %vm661_vm5, %v639_v35 }
 0x168   : > { %v656_v37 = vpop.f32.mrf.mxu3 }
 0x169   : > { %v657_v38 = vadd.f32 %v2113_v1, %v656_v37 }
 0x16b   : > { %676 = vst.msk [vmem:[%s2126_s21 + $0x70] sm:$0xff] %vm661_vm5, %v657_v38 }
 0x16c   : > { %v641_v39 = vpop.f32.mrf.mxu1 }
 0x16d   : > { %v642_v40 = vadd.f32 %v2113_v1, %v641_v39 }
 0x16f   : > { %670 = vst.msk [vmem:[%s2126_s21 + $0x40] sm:$0xff] %vm661_vm5, %v642_v40 }
 0x170   : > { %v658_v41 = vpop.f32.mrf.mxu3 }
 0x171   : > { %v659_v42 = vadd.f32 %v2113_v1, %v658_v41 }
 0x173   : > { %677 = vst.msk [vmem:[%s2126_s21 + $0x78] sm:$0xff] %vm661_vm5, %v659_v42  ;;  %888 = sbr.rel (!%p1925_p4) target bundleno = 424 (0x1a8), region = 56 }
 0x174   : > { %v643_v36 = vpop.f32.mrf.mxu1 }
 0x175   : > { %v644_v43 = vadd.f32 %v2113_v1, %v643_v36 }
 0x177   : > { %671 = vst.msk [vmem:[%s2126_s21 + $0x48] sm:$0xff] %vm661_vm5, %v644_v43 }
 0x178   : > { %s2420_s22 = smov (!%p891_p8, %s890_s22), 16 }
 0x179   : > { %s1488_s27 = sshll.u32 %s2420_s22, 3 }
 0x17a   : > { %p1491_p9 = scmp.eq.s32.totalorder %s1488_s27, 0 }
 0x17b   : > { %s2206_s28 = sshrl.u32 (!%p1491_p9), %s2420_s22, 4 }
 0x17c   : > { %899 = sbr.rel (%p1491_p9) target bundleno = 424 (0x1a8), region = 60  ;;  %p1492_p10 = scmp.le.s32.totalorder (!%p1491_p9), %s2206_s28, 0 }
 0x181   : > { %1332 = sbr.rel (%p1492_p10) target bundleno = 407 (0x197), region = 211  ;;  %s2406_s29 = smov (!%p1492_p10), %s2200_s24 }
 0x182   : > { %s2407_s11 = smov (!%p1492_p10), %s2126_s21  ;;  %s2215_s14 = smov (!%p1492_p10), 0  }
 0x183   : > { %s2217_s15 = smov (!%p1492_p10), 0  }
 0x186 LB: >> { %v992_v44 = vld [vmem:[%s1790_s11] sm:$0xff]  ;;  %v994_v45 = vld [vmem:[%s1790_s11 + $0x8] sm:$0xff]  ;;  %v996_v46 = vld [vmem:[%s1790_s11 + $0x10] sm:$0xff]  ;;  %s1024_s30 = sadd.s32 1, %s1794_s14  ;;  %s986_s15 = sadd.s32 1, %s1798_s15   ;;  %s1798_s15 = sphi %s2217_s15, %s986_s15   ;;  %s1794_s14 = sphi %s2215_s14, %s2410_s14   ;;  %s1790_s11 = sphi %s2407_s11, %s2409_s11   ;;  %s1786_s29 = sphi %s2406_s29, %s2408_s29  }
 0x187   : >> { %993 = vst [vmem:[%s1786_s29] sm:$0xff] %v992_v44  ;;  %v998_v47 = vld [vmem:[%s1790_s11 + $0x18] sm:$0xff]  ;;  %p1025_p11 = scmp.ge.s32.totalorder %s1024_s30, %s2206_s28  ;;  %v1000_v48 = vld [vmem:[%s1790_s11 + $0x20] sm:$0xff]  ;;  %v1002_v49 = vld [vmem:[%s1790_s11 + $0x28] sm:$0xff]  ;;  %p985_p12 = scmp.ge.s32.totalorder %s986_s15, %s2206_s28 }
 0x188   : >> { %995 = vst [vmem:[%s1786_s29 + $0x8] sm:$0xff] %v994_v45  ;;  %v1004_v50 = vld [vmem:[%s1790_s11 + $0x30] sm:$0xff]  ;;  %v1006_v51 = vld [vmem:[%s1790_s11 + $0x38] sm:$0xff]  ;;  %v1008_v52 = vld [vmem:[%s1790_s11 + $0x40] sm:$0xff] }
 0x189   : >> { %997 = vst [vmem:[%s1786_s29 + $0x10] sm:$0xff] %v996_v46  ;;  %s2422_s30 = smov (%p1025_p11, %s1024_s30), 0  ;;  %v1010_v53 = vld [vmem:[%s1790_s11 + $0x48] sm:$0xff]  ;;  %v1012_v54 = vld [vmem:[%s1790_s11 + $0x50] sm:$0xff]  ;;  %v1014_v55 = vld [vmem:[%s1790_s11 + $0x58] sm:$0xff] }
 0x18a   : >> { %999 = vst [vmem:[%s1786_s29 + $0x18] sm:$0xff] %v998_v47  ;;  %s1493_s19 = sshll.u32 %s2422_s30, 7  ;;  %v1016_v56 = vld [vmem:[%s1790_s11 + $0x60] sm:$0xff]  ;;  %v1018_v57 = vld [vmem:[%s1790_s11 + $0x68] sm:$0xff]  ;;  %v1020_v58 = vld [vmem:[%s1790_s11 + $0x70] sm:$0xff]  ;;  %s2410_s14 = smov %s2422_s30 }
 0x18b   : >> { %1001 = vst [vmem:[%s1786_s29 + $0x20] sm:$0xff] %v1000_v48  ;;  %s1029_s25 = scalar_lea.vmem %s2126_s21, %s1493_s19 [#allocation2]   ;;  %s1030_s26 = scalar_lea.vmem %s2200_s24, %s1493_s19   ;;  %v1022_v59 = vld [vmem:[%s1790_s11 + $0x78] sm:$0xff] }
 0x18c   : >> { %1003 = vst [vmem:[%s1786_s29 + $0x28] sm:$0xff] %v1002_v49  ;;  %s2409_s11 = smov %s1029_s25 }
 0x18d   : >> { %1005 = vst [vmem:[%s1786_s29 + $0x30] sm:$0xff] %v1004_v50 }
 0x18e   : >> { %1007 = vst [vmem:[%s1786_s29 + $0x38] sm:$0xff] %v1006_v51 }
 0x18f   : >> { %1009 = vst [vmem:[%s1786_s29 + $0x40] sm:$0xff] %v1008_v52 }
 0x190   : >> { %1011 = vst [vmem:[%s1786_s29 + $0x48] sm:$0xff] %v1010_v53 }
 0x191   : >> { %1013 = vst [vmem:[%s1786_s29 + $0x50] sm:$0xff] %v1012_v54 }
 0x192   : >> { %1015 = vst [vmem:[%s1786_s29 + $0x58] sm:$0xff] %v1014_v55  ;;  %988 = sbr.rel (!%p985_p12) target bundleno = 390 (0x186), region = 217 }
 0x193   : >> { %1017 = vst [vmem:[%s1786_s29 + $0x60] sm:$0xff] %v1016_v56 }
 0x194   : >> { %1019 = vst [vmem:[%s1786_s29 + $0x68] sm:$0xff] %v1018_v57 }
 0x195   : >> { %1021 = vst [vmem:[%s1786_s29 + $0x70] sm:$0xff] %v1020_v58 }
 0x196   : >> { %1023 = vst [vmem:[%s1786_s29 + $0x78] sm:$0xff] %v1022_v59  ;;  %s2408_s29 = smov %s1030_s26 }
 0x197 PF: > { %s2279_s23 = sand.u32 15, %s2420_s22   ;;  %s1524_s27 = sshll.u32 %s2206_s28, 7 }
 0x198   : > { %s1035_s19 = scalar_lea.vmem %s2126_s21, %s1524_s27 [#allocation2]   ;;  %s1037_s0 = scalar_lea.vmem %s2200_s24, %s1524_s27  }
 0x199   : > { %p1498_p13 = scmp.le.s32.totalorder %s2279_s23, 0 }
 0x19a   : > { %s1800_s26 = smov (!%p1498_p13), %s1037_s0   ;;  %s1804_s25 = smov (!%p1498_p13), %s1035_s19  }
 0x19b   : > { %1346 = sbr.rel (%p1498_p13) target bundleno = 424 (0x1a8), region = 222  ;;  %s1808_s1 = smov (!%p1498_p13), 0  }
 0x19c   : > { %s1812_s30 = smov (!%p1498_p13), 0  }
 0x1a0 LB: >> { %v1047_v60 = vld [vmem:[%s1806_s25] sm:$0xff]  ;;  %s1049_s22 = sadd.s32 1, %s1810_s1  ;;  %s1041_s30 = sadd.s32 1, %s1814_s30   ;;  %s1814_s30 = sphi %s1812_s30, %s1041_s30   ;;  %s1810_s1 = sphi %s1808_s1, %s1809_s1   ;;  %s1806_s25 = sphi %s1804_s25, %s1054_s25   ;;  %s1802_s26 = sphi %s1800_s26, %s1055_s26  }
 0x1a1   : >> { %1048 = vst [vmem:[%s1802_s26] sm:$0xff] %v1047_v60  ;;  %p1050_p0 = scmp.ge.s32.totalorder %s1049_s22, %s2279_s23  ;;  %p1040_p1 = scmp.ge.s32.totalorder %s1041_s30, %s2279_s23 }
 0x1a3   : >> { %s2424_s22 = smov (%p1050_p0, %s1049_s22), 0  ;;  %1043 = sbr.rel (!%p1040_p1) target bundleno = 416 (0x1a0), region = 228 }
 0x1a4   : >> { %s1499_s21 = sshll.u32 %s2424_s22, 3  ;;  %s1809_s1 = smov %s2424_s22  }
 0x1a5   : >> { %s1054_s25 = scalar_lea.vmem %s1035_s19, %s1499_s21 [#allocation2]   ;;  %s1055_s26 = scalar_lea.vmem %s1037_s0, %s1499_s21  }
 0x1a8 PF: > { %1061 = sbr.rel (!%p1925_p4) target bundleno = 477 (0x1dd), region = 108  ;;  %s1063_s1 = ssub.s32 (%p1925_p4), 38, %s1933_s20 }
 0x1a9   : > { %s1526_s24 = sshll.u32 (%p1925_p4), %s1913_s12, 7  ;;  %p1064_p2 = scmp.lt.s32.totalorder (%p1925_p4), %s1063_s1, 16 }
 0x1aa   : > { %s2294_s11 = scalar_lea.vmem (%p1925_p4), %s2400_s9, %s1526_s24  }
 0x1ad   : > { %s2426_s1 = smov (!%p1064_p2, %s1063_s1), 16 }
 0x1ae   : > { %s1502_s14 = sshll.u32 %s2426_s1, 3 }
 0x1af   : > { %p1505_p3 = scmp.eq.s32.totalorder %s1502_s14, 0 }
 0x1b0   : > { %s2300_s0 = sshrl.u32 (!%p1505_p3), %s2426_s1, 4 }
 0x1b1   : > { %1072 = sbr.rel (%p1505_p3) target bundleno = 477 (0x1dd), region = 112  ;;  %p1506_p4 = scmp.le.s32.totalorder (!%p1505_p3), %s2300_s0, 0 }
 0x1b6   : > { %1360 = sbr.rel (%p1506_p4) target bundleno = 460 (0x1cc), region = 233  ;;  %s2411_s12 = smov (!%p1506_p4), %s2294_s11 }
 0x1b7   : > { %s2412_s17 = smov (!%p1506_p4), %s2058_s18  ;;  %s2309_s20 = smov (!%p1506_p4), 0  }
 0x1b8   : > { %s2311_s15 = smov (!%p1506_p4), 0  }
 0x1bb LB: >> { %v1165_v61 = vld [vmem:[%s1822_s17] sm:$0xff]  ;;  %v1167_v62 = vld [vmem:[%s1822_s17 + $0x8] sm:$0xff]  ;;  %v1169_v63 = vld [vmem:[%s1822_s17 + $0x10] sm:$0xff]  ;;  %s1197_s23 = sadd.s32 1, %s1826_s20  ;;  %s1159_s15 = sadd.s32 1, %s1830_s15   ;;  %s1830_s15 = sphi %s2311_s15, %s1159_s15   ;;  %s1826_s20 = sphi %s2309_s20, %s2415_s20   ;;  %s1822_s17 = sphi %s2412_s17, %s2414_s17   ;;  %s1818_s12 = sphi %s2411_s12, %s2413_s12  }
 0x1bc   : >> { %1166 = vst [vmem:[%s1818_s12] sm:$0xff] %v1165_v61  ;;  %v1171_v0 = vld [vmem:[%s1822_s17 + $0x18] sm:$0xff]  ;;  %p1198_p5 = scmp.ge.s32.totalorder %s1197_s23, %s2300_s0  ;;  %v1173_v1 = vld [vmem:[%s1822_s17 + $0x20] sm:$0xff]  ;;  %v1175_v2 = vld [vmem:[%s1822_s17 + $0x28] sm:$0xff]  ;;  %p1158_p6 = scmp.ge.s32.totalorder %s1159_s15, %s2300_s0 }
 0x1bd   : >> { %1168 = vst [vmem:[%s1818_s12 + $0x8] sm:$0xff] %v1167_v62  ;;  %v1177_v3 = vld [vmem:[%s1822_s17 + $0x30] sm:$0xff]  ;;  %v1179_v4 = vld [vmem:[%s1822_s17 + $0x38] sm:$0xff]  ;;  %v1181_v5 = vld [vmem:[%s1822_s17 + $0x40] sm:$0xff] }
 0x1be   : >> { %1170 = vst [vmem:[%s1818_s12 + $0x10] sm:$0xff] %v1169_v63  ;;  %s2428_s23 = smov (%p1198_p5, %s1197_s23), 0  ;;  %v1183_v6 = vld [vmem:[%s1822_s17 + $0x48] sm:$0xff]  ;;  %v1185_v7 = vld [vmem:[%s1822_s17 + $0x50] sm:$0xff]  ;;  %v1187_v8 = vld [vmem:[%s1822_s17 + $0x58] sm:$0xff] }
 0x1bf   : >> { %1172 = vst [vmem:[%s1818_s12 + $0x18] sm:$0xff] %v1171_v0  ;;  %s1507_s27 = sshll.u32 %s2428_s23, 7  ;;  %v1189_v9 = vld [vmem:[%s1822_s17 + $0x60] sm:$0xff]  ;;  %v1191_v10 = vld [vmem:[%s1822_s17 + $0x68] sm:$0xff]  ;;  %v1193_v11 = vld [vmem:[%s1822_s17 + $0x70] sm:$0xff]  ;;  %s2415_s20 = smov %s2428_s23 }
 0x1c0   : >> { %1174 = vst [vmem:[%s1818_s12 + $0x20] sm:$0xff] %v1173_v1  ;;  %s1202_s19 = scalar_lea.vmem %s2058_s18, %s1507_s27 [#allocation3]   ;;  %s1203_s26 = scalar_lea.vmem %s2294_s11, %s1507_s27   ;;  %v1195_v12 = vld [vmem:[%s1822_s17 + $0x78] sm:$0xff] }
 0x1c1   : >> { %1176 = vst [vmem:[%s1818_s12 + $0x28] sm:$0xff] %v1175_v2  ;;  %s2414_s17 = smov %s1202_s19 }
 0x1c2   : >> { %1178 = vst [vmem:[%s1818_s12 + $0x30] sm:$0xff] %v1177_v3 }
 0x1c3   : >> { %1180 = vst [vmem:[%s1818_s12 + $0x38] sm:$0xff] %v1179_v4 }
 0x1c4   : >> { %1182 = vst [vmem:[%s1818_s12 + $0x40] sm:$0xff] %v1181_v5 }
 0x1c5   : >> { %1184 = vst [vmem:[%s1818_s12 + $0x48] sm:$0xff] %v1183_v6 }
 0x1c6   : >> { %1186 = vst [vmem:[%s1818_s12 + $0x50] sm:$0xff] %v1185_v7 }
 0x1c7   : >> { %1188 = vst [vmem:[%s1818_s12 + $0x58] sm:$0xff] %v1187_v8  ;;  %1161 = sbr.rel (!%p1158_p6) target bundleno = 443 (0x1bb), region = 239 }
 0x1c8   : >> { %1190 = vst [vmem:[%s1818_s12 + $0x60] sm:$0xff] %v1189_v9 }
 0x1c9   : >> { %1192 = vst [vmem:[%s1818_s12 + $0x68] sm:$0xff] %v1191_v10 }
 0x1ca   : >> { %1194 = vst [vmem:[%s1818_s12 + $0x70] sm:$0xff] %v1193_v11 }
 0x1cb   : >> { %1196 = vst [vmem:[%s1818_s12 + $0x78] sm:$0xff] %v1195_v12  ;;  %s2413_s12 = smov %s1203_s26 }
 0x1cc PF: > { %s2373_s25 = sand.u32 15, %s2426_s1   ;;  %s1527_s30 = sshll.u32 %s2300_s0, 7 }
 0x1cd   : > { %s1208_s22 = scalar_lea.vmem %s2058_s18, %s1527_s30 [#allocation3]   ;;  %s1210_s21 = scalar_lea.vmem %s2294_s11, %s1527_s30  }
 0x1ce   : > { %p1512_p7 = scmp.le.s32.totalorder %s2373_s25, 0 }
 0x1cf   : > { %s1832_s24 = smov (!%p1512_p7), %s1210_s21   ;;  %s1836_s28 = smov (!%p1512_p7), %s1208_s22  }
 0x1d0   : > { %1374 = sbr.rel (%p1512_p7) target bundleno = 477 (0x1dd), region = 244  ;;  %s1840_s29 = smov (!%p1512_p7), 0  }
 0x1d1   : > { %s1844_s14 = smov (!%p1512_p7), 0  }
 0x1d5 LB: >> { %v1220_v13 = vld [vmem:[%s1838_s28] sm:$0xff]  ;;  %s1222_s1 = sadd.s32 1, %s1842_s29  ;;  %s1214_s14 = sadd.s32 1, %s1846_s14   ;;  %s1846_s14 = sphi %s1844_s14, %s1214_s14   ;;  %s1842_s29 = sphi %s1840_s29, %s1841_s29   ;;  %s1838_s28 = sphi %s1836_s28, %s1227_s28   ;;  %s1834_s24 = sphi %s1832_s24, %s1228_s24  }
 0x1d6   : >> { %1221 = vst [vmem:[%s1834_s24] sm:$0xff] %v1220_v13  ;;  %p1223_p8 = scmp.ge.s32.totalorder %s1222_s1, %s2373_s25  ;;  %p1213_p9 = scmp.ge.s32.totalorder %s1214_s14, %s2373_s25 }
 0x1d8   : >> { %s2430_s1 = smov (%p1223_p8, %s1222_s1), 0  ;;  %1216 = sbr.rel (!%p1213_p9) target bundleno = 469 (0x1d5), region = 250 }
 0x1d9   : >> { %s1513_s18 = sshll.u32 %s2430_s1, 3  ;;  %s1841_s29 = smov %s2430_s1  }
 0x1da   : >> { %s1227_s28 = scalar_lea.vmem %s1208_s22, %s1513_s18 [#allocation3]   ;;  %s1228_s24 = scalar_lea.vmem %s1210_s21, %s1513_s18  }
 0x1dd PF: > { %p17_p10 = scmp.ge.s32.totalorder %s1915_s13, 5   ;;  %s2416_s30 = smov %s1778_s10 }
 0x1de   : > { %s2417_s10 = smov %s1923_s16  ;;  %s2418_s11 = smov %s1915_s13 }
 0x1df   :  { %19 = sbr.rel (!%p17_p10) target bundleno = 5 (0x5), region = 261 }

</bundles_post_ra>
